<compile_context>
chip_gen: v7x
topology: tpu7x:2x2x1
jax: 0.10.0
libtpu: 0.0.40
codegen_flags: <defaults>
</compile_context>

<pallas_src>
import jax
import jax.numpy as jnp
from jax.experimental import pallas as pl
from jax.experimental.pallas import tpu as pltpu


# ----------------------------------------------------------------------------
# VMEM budgeting / tile selection
# ----------------------------------------------------------------------------
def _vmem_limit_bytes():
    """Scoped-VMEM limit: ~3/4 of physical VMEM, capped so v7x (64 MiB) is safe."""
    try:
        info = pltpu.get_tpu_info()
        cap = int(getattr(info, "vmem_capacity_bytes", 64 << 20))
    except Exception:
        cap = 64 << 20  # conservative fallback (v7x per-TC VMEM)
    return int(min((cap * 3) // 4, 96 << 20))


def _pick_pixel_tile(hw, max_stream_channels, bytes_per_elem, vmem_budget):
    """Largest lane-dense pixel tile whose double-buffered blocks fit the budget."""
    for tp in (2048, 1024, 512, 256, 128):
        if hw % tp == 0 and 2 * max_stream_channels * tp * bytes_per_elem <= vmem_budget:
            return tp
    return hw


# ----------------------------------------------------------------------------
# Kernel 1: fused W_g / W_x 1x1 convs (bias dropped: absorbed by BN) on one
# (batch, pixel-tile) block + packed per-tile partial BN statistics.
# ----------------------------------------------------------------------------
def conv_gx_kernel(g_ref, x_ref, wg_ref, wx_ref, yg_ref, yx_ref, stats_ref):
    # g_ref: (1, Fg, TP)  x_ref: (1, Fl, TP)   (stream dtype, e.g. bf16)
    # wg_ref: (Fint, Fg)  wx_ref: (Fint, Fl)   (stream dtype)
    # yg_ref / yx_ref: (1, Fint, TP) conv outputs (stream dtype)
    # stats_ref: (1, 1, 4*Fint, 1) f32 = [sum_g; sum_x; sumsq_g; sumsq_x]
    f_int = wg_ref.shape[0]
    gp = jnp.dot(wg_ref[...], g_ref[0], preferred_element_type=jnp.float32)
    xp = jnp.dot(wx_ref[...], x_ref[0], preferred_element_type=jnp.float32)
    yg_ref[0] = gp.astype(yg_ref.dtype)
    yx_ref[0] = xp.astype(yx_ref.dtype)
    # Partial stats from the f32 accumulator values (before any downcast).
    stats_ref[0, 0, 0 * f_int:1 * f_int] = jnp.sum(gp, axis=1, keepdims=True)
    stats_ref[0, 0, 1 * f_int:2 * f_int] = jnp.sum(xp, axis=1, keepdims=True)
    stats_ref[0, 0, 2 * f_int:3 * f_int] = jnp.sum(gp * gp, axis=1, keepdims=True)
    stats_ref[0, 0, 3 * f_int:4 * f_int] = jnp.sum(xp * xp, axis=1, keepdims=True)


# ----------------------------------------------------------------------------
# Kernel 2: folded BN (per-branch scale, combined shift) -> ReLU -> psi 1x1
# conv (VPU broadcast-mul + sublane reduce; F_int << MXU width), plus packed
# partial stats of the psi pre-activation.
# ----------------------------------------------------------------------------
def gate_kernel(yg_ref, yx_ref, coef_ref, p_ref, pstats_ref):
    # yg/yx: (1, Fint, TP) stream dtype
    # coef_ref: (4, Fint, 1) f32 = [scale_g; scale_x; shift_g+shift_x; w_psi]
    # p_ref: (1, 1, TP) stream dtype (psi conv bias dropped: absorbed by BN)
    # pstats_ref: (1, 1, 2, 1) f32 = [sum_p; sumsq_p]
    scale_g = coef_ref[0]
    scale_x = coef_ref[1]
    shift = coef_ref[2]
    w_psi = coef_ref[3]
    s = jnp.maximum(yg_ref[0].astype(jnp.float32) * scale_g
                    + yx_ref[0].astype(jnp.float32) * scale_x
                    + shift, 0.0)                                # (Fint, TP)
    p = jnp.sum(s * w_psi, axis=0, keepdims=True)                # (1, TP)
    p_ref[0] = p.astype(p_ref.dtype)
    pstats_ref[0, 0, 0:1] = jnp.sum(p, axis=1, keepdims=True)
    pstats_ref[0, 0, 1:2] = jnp.sum(p * p, axis=1, keepdims=True)


# ----------------------------------------------------------------------------
# Kernel 3: psi BatchNorm (scalar scale/shift from SMEM) -> Sigmoid -> gate x.
# ----------------------------------------------------------------------------
def apply_gate_kernel(sp_ref, x_ref, p_ref, o_ref):
    # sp_ref: SMEM (2,) f32 = [scale_p, shift_p]
    # x_ref: (1, Fl, TP)   p_ref: (1, 1, TP)   o_ref: (1, Fl, TP)
    psi = jax.nn.sigmoid(p_ref[0].astype(jnp.float32) * sp_ref[0] + sp_ref[1])
    o_ref[0] = (x_ref[0].astype(jnp.float32) * psi).astype(o_ref.dtype)


# ----------------------------------------------------------------------------
# Wrapper
# ----------------------------------------------------------------------------
def attention_block_forward(g, x, params, eps=1e-5,
                            stream_dtype=jnp.bfloat16, out_dtype=None):
    """g: (N, F_g, H, W), x: (N, F_l, H, W). Returns (N, F_l, H, W)."""
    (wg, bg, gamma_g, beta_g,
     wx, bx, gamma_x, beta_x,
     wpsi, bpsi, gamma_p, beta_p) = params
    del bg, bx, bpsi  # conv biases are exactly absorbed by training-mode BN

    N, Fg, H, W = g.shape
    _, Fl, _, _ = x.shape
    Fint = wg.shape[0]
    HW = H * W
    out_dtype = x.dtype if out_dtype is None else out_dtype

    bpe = jnp.dtype(stream_dtype).itemsize
    # Worst-case channels streamed per grid step across the three kernels,
    # double-buffered by the BlockSpec pipeline.
    max_ch = max(Fg + Fl + 2 * Fint, 2 * Fint + 1, 2 * Fl + 1)
    vmem_limit = _vmem_limit_bytes()
    TP = _pick_pixel_tile(HW, max_ch, bpe, (vmem_limit * 7) // 10)
    assert HW % TP == 0
    T = HW // TP

    g2 = g.reshape(N, Fg, HW).astype(stream_dtype)
    x2 = x.reshape(N, Fl, HW).astype(stream_dtype)
    wg_s = wg.astype(stream_dtype)
    wx_s = wx.astype(stream_dtype)

    # NOTE: pipeline_mode=pl.Buffered(3) on the streaming inputs of kernels 2/3
    # is a possible extra win on v7x; keep default depth 2 until measured.
    par = pltpu.CompilerParams(
        dimension_semantics=("parallel", "parallel"),
        vmem_limit_bytes=vmem_limit)

    # --- Kernel 1: fused g/x 1x1 convs + packed partial BN stats -------------
    yg, yx, stats = pl.pallas_call(
        conv_gx_kernel,
        out_shape=(
            jax.ShapeDtypeStruct((N, Fint, HW), stream_dtype),
            jax.ShapeDtypeStruct((N, Fint, HW), stream_dtype),
            jax.ShapeDtypeStruct((N, T, 4 * Fint, 1), jnp.float32),
        ),
        grid_spec=pltpu.PrefetchScalarGridSpec(
            num_scalar_prefetch=0,
            grid=(N, T),
            in_specs=[
                pl.BlockSpec((1, Fg, TP), lambda n, t: (n, 0, t)),
                pl.BlockSpec((1, Fl, TP), lambda n, t: (n, 0, t)),
                pl.BlockSpec((Fint, Fg), lambda n, t: (0, 0)),
                pl.BlockSpec((Fint, Fl), lambda n, t: (0, 0)),
            ],
            out_specs=[
                pl.BlockSpec((1, Fint, TP), lambda n, t: (n, 0, t)),
                pl.BlockSpec((1, Fint, TP), lambda n, t: (n, 0, t)),
                pl.BlockSpec((1, 1, 4 * Fint, 1), lambda n, t: (n, t, 0, 0)),
            ],
        ),
        compiler_params=par,
    )(g2, x2, wg_s, wx_s)

    # --- glue: fold batch stats into per-channel scale / combined shift ------
    count = jnp.float32(N * HW)
    st = jnp.sum(stats, axis=(0, 1))[:, 0]                      # (4*Fint,) f32
    sum_g, sum_x = st[:Fint], st[Fint:2 * Fint]
    ssq_g, ssq_x = st[2 * Fint:3 * Fint], st[3 * Fint:]
    mean_g, mean_x = sum_g / count, sum_x / count
    var_g = ssq_g / count - mean_g * mean_g                      # biased (training)
    var_x = ssq_x / count - mean_x * mean_x
    scale_g = gamma_g / jnp.sqrt(var_g + eps)
    scale_x = gamma_x / jnp.sqrt(var_x + eps)
    shift_comb = (beta_g - mean_g * scale_g) + (beta_x - mean_x * scale_x)
    coef = jnp.stack(
        [scale_g, scale_x, shift_comb, wpsi.reshape(Fint)], axis=0
    ).reshape(4, Fint, 1).astype(jnp.float32)

    # --- Kernel 2: folded BN + ReLU + psi conv + packed partial stats --------
    p, pstats = pl.pallas_call(
        gate_kernel,
        out_shape=(
            jax.ShapeDtypeStruct((N, 1, HW), stream_dtype),
            jax.ShapeDtypeStruct((N, T, 2, 1), jnp.float32),
        ),
        grid_spec=pltpu.PrefetchScalarGridSpec(
            num_scalar_prefetch=0,
            grid=(N, T),
            in_specs=[
                pl.BlockSpec((1, Fint, TP), lambda n, t: (n, 0, t)),
                pl.BlockSpec((1, Fint, TP), lambda n, t: (n, 0, t)),
                pl.BlockSpec((4, Fint, 1), lambda n, t: (0, 0, 0)),
            ],
            out_specs=[
                pl.BlockSpec((1, 1, TP), lambda n, t: (n, 0, t)),
                pl.BlockSpec((1, 1, 2, 1), lambda n, t: (n, t, 0, 0)),
            ],
        ),
        compiler_params=par,
    )(yg, yx, coef)

    # --- glue: psi BN (single channel) -> scalar scale / shift ---------------
    pst = jnp.sum(pstats, axis=(0, 1))                           # (2, 1)
    mean_p = pst[0, 0] / count
    var_p = pst[1, 0] / count - mean_p * mean_p
    scale_p = gamma_p[0] / jnp.sqrt(var_p + eps)
    shift_p = beta_p[0] - mean_p * scale_p
    sp = jnp.stack([scale_p, shift_p]).astype(jnp.float32)       # (2,) -> SMEM

    # --- Kernel 3: BN + Sigmoid + gate x --------------------------------------
    out = pl.pallas_call(
        apply_gate_kernel,
        out_shape=jax.ShapeDtypeStruct((N, Fl, HW), out_dtype),
        grid_spec=pltpu.PrefetchScalarGridSpec(
            num_scalar_prefetch=0,
            grid=(N, T),
            in_specs=[
                pl.BlockSpec(memory_space=pltpu.MemorySpace.SMEM),
                pl.BlockSpec((1, Fl, TP), lambda n, t: (n, 0, t)),
                pl.BlockSpec((1, 1, TP), lambda n, t: (n, 0, t)),
            ],
            out_specs=pl.BlockSpec((1, Fl, TP), lambda n, t: (n, 0, t)),
        ),
        compiler_params=par,
    )(sp, x2, p)

    return out.reshape(N, Fl, H, W)


# ----------------------------------------------------------------------------
# Plain-JAX reference (same training-mode BN semantics, with biases)
# ----------------------------------------------------------------------------
def attention_block_reference(g, x, params, eps=1e-5):
    (wg, bg, gamma_g, beta_g,
     wx, bx, gamma_x, beta_x,
     wpsi, bpsi, gamma_p, beta_p) = params

    def conv1x1(inp, w, b):
        return jnp.einsum('oc,nchw->nohw', w, inp) + b.reshape(1, -1, 1, 1)

    def bn(y, gamma, beta):
        mean = jnp.mean(y, axis=(0, 2, 3), keepdims=True)
        var = jnp.mean((y - mean) ** 2, axis=(0, 2, 3), keepdims=True)
        y = (y - mean) / jnp.sqrt(var + eps)
        return y * gamma.reshape(1, -1, 1, 1) + beta.reshape(1, -1, 1, 1)

    g1 = bn(conv1x1(g, wg, bg), gamma_g, beta_g)
    x1 = bn(conv1x1(x, wx, bx), gamma_x, beta_x)
    s = jnp.maximum(g1 + x1, 0.0)
    psi = bn(conv1x1(s, wpsi.reshape(1, -1), bpsi), gamma_p, beta_p)
    psi = jax.nn.sigmoid(psi)
    return x * psi


if __name__ == "__main__":
    # Small shapes consistent with the module: batch=2, F_g=F_l=4, F_int=8, 16x16.
    N, F_g, F_l, F_int, H, W = 2, 4, 4, 8, 16, 16

    key = jax.random.PRNGKey(0)
    ks = jax.random.split(key, 8)
    g = jax.random.normal(ks[0], (N, F_g, H, W), dtype=jnp.float32)
    x = jax.random.normal(ks[1], (N, F_l, H, W), dtype=jnp.float32)
    # Conv 1x1 params as (C_out, C_in) matrices (= PyTorch weight[:, :, 0, 0]).
    wg = 0.3 * jax.random.normal(ks[2], (F_int, F_g), dtype=jnp.float32)
    bg = 0.1 * jax.random.normal(ks[3], (F_int,), dtype=jnp.float32)
    wx = 0.3 * jax.random.normal(ks[4], (F_int, F_l), dtype=jnp.float32)
    bx = 0.1 * jax.random.normal(ks[5], (F_int,), dtype=jnp.float32)
    wpsi = 0.3 * jax.random.normal(ks[6], (1, F_int), dtype=jnp.float32)
    bpsi = 0.1 * jax.random.normal(ks[7], (1,), dtype=jnp.float32)
    # BatchNorm2d default init: gamma=1, beta=0.
    gamma_g = jnp.ones((F_int,), jnp.float32); beta_g = jnp.zeros((F_int,), jnp.float32)
    gamma_x = jnp.ones((F_int,), jnp.float32); beta_x = jnp.zeros((F_int,), jnp.float32)
    gamma_p = jnp.ones((1,), jnp.float32); beta_p = jnp.zeros((1,), jnp.float32)

    params = (wg, bg, gamma_g, beta_g,
              wx, bx, gamma_x, beta_x,
              wpsi, bpsi, gamma_p, beta_p)

    ref = attention_block_reference(g, x, params)

    # Strict check: f32 streaming path (same kernels, exact up to f32 rounding).
    out_f32 = attention_block_forward(g, x, params, stream_dtype=jnp.float32)
    out_f32 = jax.block_until_ready(out_f32)
    assert out_f32.shape == (N, F_l, H, W)
    assert jnp.allclose(out_f32, ref, atol=1e-4, rtol=1e-4), "f32 path mismatch"

    # Default production path: bf16 streaming (≈ halves HBM traffic).
    out_bf = attention_block_forward(g, x, params)
    out_bf = jax.block_until_ready(out_bf)
    assert out_bf.shape == (N, F_l, H, W)
    assert jnp.allclose(out_bf.astype(jnp.float32), ref, atol=1e-1, rtol=1e-1), \
        "bf16 path mismatch"

    print("KERNEL_OK")
</pallas_src>

<mosaic_0001>
module attributes {stable_mosaic.version = 11 : i64} {
  func.func @conv_gx_kernel(%arg0: i32, %arg1: i32, %arg2: memref<1x4x256xf32, #tpu.memory_space<vmem>>, %arg3: memref<1x4x256xf32, #tpu.memory_space<vmem>>, %arg4: memref<8x4xf32, #tpu.memory_space<vmem>>, %arg5: memref<8x4xf32, #tpu.memory_space<vmem>>, %arg6: memref<1x8x256xf32, #tpu.memory_space<vmem>>, %arg7: memref<1x8x256xf32, #tpu.memory_space<vmem>>, %arg8: memref<1x1x32x1xf32, #tpu.memory_space<vmem>>) attributes {dimension_semantics = [#tpu.dimension_semantics<parallel>, #tpu.dimension_semantics<parallel>], iteration_bounds = array<i64: 2, 1>, scalar_prefetch = 0 : i64, scratch_operands = 0 : i64, tpu.core_type = #tpu.core_type<tc>, window_params = [{transform_indices = @transform_0, window_bounds = array<i64: 1, 4, 256>}, {transform_indices = @transform_1, window_bounds = array<i64: 1, 4, 256>}, {pipeline_mode = #tpu.pipeline_mode<synchronous>, transform_indices = @transform_2, window_bounds = array<i64: 8, 4>}, {pipeline_mode = #tpu.pipeline_mode<synchronous>, transform_indices = @transform_3, window_bounds = array<i64: 8, 4>}, {transform_indices = @transform_4, window_bounds = array<i64: 1, 8, 256>}, {transform_indices = @transform_5, window_bounds = array<i64: 1, 8, 256>}, {transform_indices = @transform_6, window_bounds = array<i64: 1, 1, 32, 1>}]} {
    %c0 = arith.constant 0 : index
    %c0_0 = arith.constant 0 : index
    %0 = vector.load %arg4[%c0, %c0_0] : memref<8x4xf32, #tpu.memory_space<vmem>>, vector<8x4xf32>
    %c0_1 = arith.constant 0 : index
    %c0_2 = arith.constant 0 : index
    %c0_3 = arith.constant 0 : index
    %1 = vector.load %arg2[%c0_1, %c0_2, %c0_3] : memref<1x4x256xf32, #tpu.memory_space<vmem>>, vector<1x4x256xf32>
    %2 = vector.shape_cast %1 : vector<1x4x256xf32> to vector<4x256xf32>
    %cst = arith.constant dense<0.000000e+00> : vector<8x256xf32>
    %3 = tpu.matmul %0, %2, %cst {dimension_numbers = #tpu.dot_dimension_numbers<[1], [0], [0], [1], [0, 0, 1, 1], [], []>} : vector<8x4xf32>, vector<4x256xf32>, vector<8x256xf32> -> vector<8x256xf32>
    %c0_4 = arith.constant 0 : index
    %c0_5 = arith.constant 0 : index
    %4 = vector.load %arg5[%c0_4, %c0_5] : memref<8x4xf32, #tpu.memory_space<vmem>>, vector<8x4xf32>
    %c0_6 = arith.constant 0 : index
    %c0_7 = arith.constant 0 : index
    %c0_8 = arith.constant 0 : index
    %5 = vector.load %arg3[%c0_6, %c0_7, %c0_8] : memref<1x4x256xf32, #tpu.memory_space<vmem>>, vector<1x4x256xf32>
    %6 = vector.shape_cast %5 : vector<1x4x256xf32> to vector<4x256xf32>
    %cst_9 = arith.constant dense<0.000000e+00> : vector<8x256xf32>
    %7 = tpu.matmul %4, %6, %cst_9 {dimension_numbers = #tpu.dot_dimension_numbers<[1], [0], [0], [1], [0, 0, 1, 1], [], []>} : vector<8x4xf32>, vector<4x256xf32>, vector<8x256xf32> -> vector<8x256xf32>
    %c0_10 = arith.constant 0 : index
    %c0_11 = arith.constant 0 : index
    %c0_12 = arith.constant 0 : index
    %8 = vector.load %arg6[%c0_10, %c0_11, %c0_12] : memref<1x8x256xf32, #tpu.memory_space<vmem>>, vector<1x8x256xf32>
    %9 = vector.shape_cast %8 : vector<1x8x256xf32> to vector<8x256xf32>
    %10 = vector.shape_cast %3 : vector<8x256xf32> to vector<1x8x256xf32>
    tpu.vector_store %arg6[%c0_10, %c0_11, %c0_12], %10 {strides = array<i32>} : memref<1x8x256xf32, #tpu.memory_space<vmem>>, vector<1x8x256xf32>,
    %c0_13 = arith.constant 0 : index
    %c0_14 = arith.constant 0 : index
    %c0_15 = arith.constant 0 : index
    %11 = vector.load %arg7[%c0_13, %c0_14, %c0_15] : memref<1x8x256xf32, #tpu.memory_space<vmem>>, vector<1x8x256xf32>
    %12 = vector.shape_cast %11 : vector<1x8x256xf32> to vector<8x256xf32>
    %13 = vector.shape_cast %7 : vector<8x256xf32> to vector<1x8x256xf32>
    tpu.vector_store %arg7[%c0_13, %c0_14, %c0_15], %13 {strides = array<i32>} : memref<1x8x256xf32, #tpu.memory_space<vmem>>, vector<1x8x256xf32>,
    %cst_16 = arith.constant dense<0.000000e+00> : vector<8xf32>
    %14 = vector.multi_reduction <add>, %3, %cst_16 [1] : vector<8x256xf32> to vector<8xf32>
    %15 = vector.shape_cast %14 : vector<8xf32> to vector<8x1xf32>
    %c0_17 = arith.constant 0 : index
    %c0_18 = arith.constant 0 : index
    %c0_19 = arith.constant 0 : index
    %c0_20 = arith.constant 0 : index
    %16 = vector.load %arg8[%c0_17, %c0_18, %c0_19, %c0_20] : memref<1x1x32x1xf32, #tpu.memory_space<vmem>>, vector<1x1x8x1xf32>
    %17 = vector.shape_cast %16 : vector<1x1x8x1xf32> to vector<8x1xf32>
    %18 = vector.shape_cast %15 : vector<8x1xf32> to vector<1x1x8x1xf32>
    tpu.vector_store %arg8[%c0_17, %c0_18, %c0_19, %c0_20], %18 {strides = array<i32>} : memref<1x1x32x1xf32, #tpu.memory_space<vmem>>, vector<1x1x8x1xf32>,
    %cst_21 = arith.constant dense<0.000000e+00> : vector<8xf32>
    %19 = vector.multi_reduction <add>, %7, %cst_21 [1] : vector<8x256xf32> to vector<8xf32>
    %20 = vector.shape_cast %19 : vector<8xf32> to vector<8x1xf32>
    %c0_22 = arith.constant 0 : index
    %c0_23 = arith.constant 0 : index
    %c8 = arith.constant 8 : index
    %c0_24 = arith.constant 0 : index
    %21 = vector.load %arg8[%c0_22, %c0_23, %c8, %c0_24] : memref<1x1x32x1xf32, #tpu.memory_space<vmem>>, vector<1x1x8x1xf32>
    %22 = vector.shape_cast %21 : vector<1x1x8x1xf32> to vector<8x1xf32>
    %23 = vector.shape_cast %20 : vector<8x1xf32> to vector<1x1x8x1xf32>
    tpu.vector_store %arg8[%c0_22, %c0_23, %c8, %c0_24], %23 {strides = array<i32>} : memref<1x1x32x1xf32, #tpu.memory_space<vmem>>, vector<1x1x8x1xf32>,
    %24 = arith.mulf %3, %3 : vector<8x256xf32>
    %cst_25 = arith.constant dense<0.000000e+00> : vector<8xf32>
    %25 = vector.multi_reduction <add>, %24, %cst_25 [1] : vector<8x256xf32> to vector<8xf32>
    %26 = vector.shape_cast %25 : vector<8xf32> to vector<8x1xf32>
    %c0_26 = arith.constant 0 : index
    %c0_27 = arith.constant 0 : index
    %c16 = arith.constant 16 : index
    %c0_28 = arith.constant 0 : index
    %27 = vector.load %arg8[%c0_26, %c0_27, %c16, %c0_28] : memref<1x1x32x1xf32, #tpu.memory_space<vmem>>, vector<1x1x8x1xf32>
    %28 = vector.shape_cast %27 : vector<1x1x8x1xf32> to vector<8x1xf32>
    %29 = vector.shape_cast %26 : vector<8x1xf32> to vector<1x1x8x1xf32>
    tpu.vector_store %arg8[%c0_26, %c0_27, %c16, %c0_28], %29 {strides = array<i32>} : memref<1x1x32x1xf32, #tpu.memory_space<vmem>>, vector<1x1x8x1xf32>,
    %30 = arith.mulf %7, %7 : vector<8x256xf32>
    %cst_29 = arith.constant dense<0.000000e+00> : vector<8xf32>
    %31 = vector.multi_reduction <add>, %30, %cst_29 [1] : vector<8x256xf32> to vector<8xf32>
    %32 = vector.shape_cast %31 : vector<8xf32> to vector<8x1xf32>
    %c0_30 = arith.constant 0 : index
    %c0_31 = arith.constant 0 : index
    %c24 = arith.constant 24 : index
    %c0_32 = arith.constant 0 : index
    %33 = vector.load %arg8[%c0_30, %c0_31, %c24, %c0_32] : memref<1x1x32x1xf32, #tpu.memory_space<vmem>>, vector<1x1x8x1xf32>
    %34 = vector.shape_cast %33 : vector<1x1x8x1xf32> to vector<8x1xf32>
    %35 = vector.shape_cast %32 : vector<8x1xf32> to vector<1x1x8x1xf32>
    tpu.vector_store %arg8[%c0_30, %c0_31, %c24, %c0_32], %35 {strides = array<i32>} : memref<1x1x32x1xf32, #tpu.memory_space<vmem>>, vector<1x1x8x1xf32>,
    return
  }
  func.func @transform_0(%arg0: i32, %arg1: i32) -> (i32, i32, i32) {
    %c0_i32 = arith.constant 0 : i32
    %c0_i32_0 = arith.constant 0 : i32
    return %arg0, %c0_i32, %arg1 : i32, i32, i32
  }
  func.func @transform_1(%arg0: i32, %arg1: i32) -> (i32, i32, i32) {
    %c0_i32 = arith.constant 0 : i32
    %c0_i32_0 = arith.constant 0 : i32
    return %arg0, %c0_i32, %arg1 : i32, i32, i32
  }
  func.func @transform_2(%arg0: i32, %arg1: i32) -> (i32, i32) {
    %c0_i32 = arith.constant 0 : i32
    %c0_i32_0 = arith.constant 0 : i32
    %c0_i32_1 = arith.constant 0 : i32
    return %c0_i32, %c0_i32_0 : i32, i32
  }
  func.func @transform_3(%arg0: i32, %arg1: i32) -> (i32, i32) {
    %c0_i32 = arith.constant 0 : i32
    %c0_i32_0 = arith.constant 0 : i32
    %c0_i32_1 = arith.constant 0 : i32
    return %c0_i32, %c0_i32_0 : i32, i32
  }
  func.func @transform_4(%arg0: i32, %arg1: i32) -> (i32, i32, i32) {
    %c0_i32 = arith.constant 0 : i32
    %c0_i32_0 = arith.constant 0 : i32
    return %arg0, %c0_i32, %arg1 : i32, i32, i32
  }
  func.func @transform_5(%arg0: i32, %arg1: i32) -> (i32, i32, i32) {
    %c0_i32 = arith.constant 0 : i32
    %c0_i32_0 = arith.constant 0 : i32
    return %arg0, %c0_i32, %arg1 : i32, i32, i32
  }
  func.func @transform_6(%arg0: i32, %arg1: i32) -> (i32, i32, i32, i32) {
    %c0_i32 = arith.constant 0 : i32
    %c0_i32_0 = arith.constant 0 : i32
    %c0_i32_1 = arith.constant 0 : i32
    return %arg0, %arg1, %c0_i32, %c0_i32_0 : i32, i32, i32, i32
  }
}

</mosaic_0001>

<bundles_post_ra>
// kernel: tpu_custom_call.1
= control target key start
LH: loop header
LB: loop body
LE: loop exit
PB: predicated region body
PF: predicated region fallthrough
CT: control target
= control target key end

     0   :  { %s1278_s0 = inlined_call_operand.vmem [shape: f32[2,4,256], index: 0, kind: input, shape index: {}]   ;;  %s1279_s1 = inlined_call_operand.hbm [shape: f32[2,4,256], index: 1, kind: input, shape index: {}]   ;;  %s1280_s2 = inlined_call_operand.vmem [shape: f32[8,4], index: 2, kind: input, shape index: {}]   ;;  %s1281_s3 = inlined_call_operand.vmem [shape: f32[8,4], index: 3, kind: input, shape index: {}]   ;;  %s1282_s4 = inlined_call_operand.hbm [shape: f32[2,8,256], index: 4, kind: output, shape index: {0}]   ;;  %s1283_s5 = inlined_call_operand.hbm [shape: f32[2,8,256], index: 5, kind: output, shape index: {1}]   ;;  %s1284_s6 = inlined_call_operand.vmem [shape: f32[2,1,32,1], index: 6, kind: output, shape index: {2}]  }
   0x1   :  { %1287 = sst [smem:[#allocation11_spill]] %s1278_s0 }
   0x2   :  { %1288 = sst [smem:[#allocation12_spill]] %s1279_s1 }
   0x3   :  { %12 = vsyncpa [#allocation3], 0 }
   0x4   :  { %14 = vsyncpa [#allocation3 + $0x1], 0 }
   0x5   :  { %15 = vsyncpa [#allocation4], 0 }
   0x6   :  { %17 = vsyncpa [#allocation4 + $0x1], 0 }
   0x7   :  { %18 = vsyncpa [#allocation7], 0 }
   0x8   :  { %20 = vsyncpa [#allocation7 + $0x1], 0  ;;  %s1068_s21 = smov 0   ;;  %s1070_s22 = smov 0  }
   0x9   :  { %s1072_s23 = smov 0   ;;  %s1074_s24 = smov 0  }
   0xa   :  { %s1076_s25 = smov 0   ;;  %s1078_s26 = smov 0  }
   0xb LB: > { %s779_s27 = sadd.s32 4294967295, %s1027_s26   ;;  %s780_s28 = sadd.s32 4294967294, %s1027_s26   ;;  %s1027_s26 = sphi %s1078_s26, %s26_s26   ;;  %s1023_s25 = sphi %s1076_s25, %s1306_s25   ;;  %s1019_s24 = sphi %s1074_s24, %s1305_s24   ;;  %s1015_s23 = sphi %s1072_s23, %s1304_s23   ;;  %s1011_s22 = sphi %s1070_s22, %s1303_s22   ;;  %s1007_s21 = sphi %s1068_s21, %s1302_s21  }
   0xc   : > { %s38_s29 = sadd.s32 1, %s1023_s25  ;;  %s75_s30 = sadd.s32 1, %s1015_s23 }
   0xd   : > { %p40_p0 = scmp.ge.s32.totalorder %s38_s29, 2  ;;  %p82_p1 = scmp.ne.s32.totalorder %s1015_s23, %s1011_s22 }
   0xe   : > { %p83_p2 = scmp.eq.s32.totalorder %s1027_s26, 0  ;;  %p88_p3 = scmp.ne.s32.totalorder %s1011_s22, %s1007_s21 }
   0xf   : > { %s1308_s29 = smov (%p40_p0, %s38_s29), 0  ;;  %p89_p5 = scmp.eq.s32.totalorder %s779_s27, 0 }
  0x10   : > { %p1109_p4 = por %p83_p2, %p82_p1  ;;  %s70_s8 = ssub.s32 %s1023_s25, %s1308_s29 }
  0x11   : > { %p156_p6 = scmp.eq.s32.totalorder %s779_s27, 1  ;;  %p73_p7 = scmp.eq.s32.totalorder %s70_s8, 0 }
  0x12   : > { %p1115_p8 = por %p89_p5, %p88_p3  ;;  %p162_p10 = scmp.eq.s32.totalorder %s780_s28, 1 }
  0x13   : > { %p1119_p9 = por %p156_p6, %p82_p1  ;;  %p830_p13 = scmp.lt.s32.totalorder %s1027_s26, 2 }
  0x14   : > { %s1124_s11 = scalar_select %p73_p7, %s1015_s23, %s75_s30  }
  0x15   : > { %s1291_s10 = scalar_select %p1119_p9, 1, 0 }
  0x16   : > { %p1126_p11 = por %p162_p10, %p88_p3  ;;  %s257_s13 = sand.u32 1, %s1015_s23  }
  0x17   : > { %s783_s14 = sshll.u32 %s257_s13, 3  ;;  %s808_s15 = sshll.u32 %s1023_s25, 7 }
  0x18   : > { %s1292_s12 = scalar_select %p1126_p11, 1, 0 }
  0x19   : > { %s1293_s1 = sld [smem:[#allocation12_spill]]  ;;  %s261_s19 = scalar_lea.vmem [#allocation2], %s783_s14 }
  0x1a   : > { %s271_s20 = sshll.u32 %s261_s19, 4  ;;  %p1143_p0 = pnand %p830_p13, %p1109_p4  ;;  %s1139_s20 = int_to_ptr.vmem [resolvable:$true] %s271_s20 }
  0x1b   : > { %s258_s28 = scalar_lea.sflag [#allocation3], %s257_s13 }
  0x1c   : > { %p885_p5 = pneg %p1143_p0 }
  0x1f   : > { %s1137_s18 = scalar_lea.hbm %s1293_s1, %s808_s15  ;;  %s888_s7 = scalar_lea.hbm %s1293_s1, 256 }
  0x20   : > { %s883_s30 = scalar_lea.hbm %s1137_s18, 128  ;;  %p889_p4 = scmp.lt.u32.totalorder %s1137_s18, %s1293_s1 }
  0x21   : > { %p884_p3 = scmp.ne.s32.totalorder %s1137_s18, %s883_s30  ;;  %p890_p10 = scmp.lt.u32.totalorder %s888_s7, %s883_s30 }
  0x22   : > { %p892_p12 = scmp.lt.u32.totalorder %s883_s30, %s1137_s18 }
  0x23   : > { %p886_p6 = pnand %p885_p5, %p884_p3  ;;  %p891_p13 = por %p890_p10, %p889_p4 }
  0x25   : > { %p887_p7 = pneg %p886_p6  ;;  %p893_p1 = por %p892_p12, %p891_p13 }
  0x27   : > { %p894_p2 = pnand %p893_p1, %p887_p7 }
  0x29   : > { %897 = shalt.err (!%p894_p2)
}
  0x2a   : > { %s898_s13 = scalar_lea.vmem %s1139_s20, 128  ;;  %s1029_s17 = smov [#allocation2]  }
  0x2b   : > { %p899_p3 = scmp.ne.s32.totalorder %s1139_s20, %s898_s13  ;;  %s903_s19 = sshll.u32 %s1029_s17, 4  ;;  %s904_s19 = int_to_ptr.vmem [resolvable:$false] %s903_s19 }
  0x2c   : > { %s905_s8 = scalar_lea.vmem %s904_s19, 256  ;;  %p906_p9 = scmp.lt.s32.totalorder %s1139_s20, %s904_s19 }
  0x2d   : > { %p901_p6 = pnand %p899_p3, %p885_p5  ;;  %p907_p4 = scmp.lt.s32.totalorder %s905_s8, %s898_s13 }
  0x2f   : > { %p902_p11 = pneg %p901_p6  ;;  %p908_p10 = por %p907_p4, %p906_p9 }
  0x31   : > { %p909_p12 = pnand %p908_p10, %p902_p11 }
  0x33   : > { %912 = shalt.err (!%p909_p12)
}
  0x34   : > { %822 = dma.hbm_to_vmem [thread:$0]  (!%p1143_p0), %s1137_s18, 128, %s1139_s20, %s258_s28  }
  0x35   : > { %p1295_p1 = scmp.lt.s32.totalorder %s1027_s26, 3  ;;  %p1296_p2 = scmp.ge.s32.totalorder %s1027_s26, 1 }
  0x37   : > { %p277_p5 = pnand %p1296_p2, %p1295_p1 }
  0x38   : > { %s1179_s30 = sand.u32 (!%p277_p5), 1, %s1011_s22  }
  0x39   : > { %280 = sbr.rel (%p277_p5) target bundleno = 441 (0x1b9), region = 36  ;;  %s787_s14 = sshll.u32 (!%p277_p5), %s1179_s30, 3 }
  0x3a   : > { %s283_s7 = scalar_lea.sflag (!%p277_p5), [#allocation3], %s1179_s30  ;;  %s286_s15 = scalar_lea.vmem (!%p277_p5), [#allocation2], %s787_s14 }
  0x40   : > { %994 = dma.done.wait (%p1115_p8), %s283_s7, 128  }
  0x41   : > { %996 = vsyncadd (%p1115_p8), %s283_s7, 4294967168  ;;  %p339_p9 = scmp.lt.s32.totalorder %s1019_s24, 1  ;;  %v1030_v0 = vmov 0.0   ;;  %s1297_s0 = sld [smem:[#allocation11_spill]]  ;;  %vm368_vm0 = vcmask 1043456   ;;  %v445_v2 = vld [vmem:[%s286_s15] sm:$0xff] }
  0x42   : > { %437 = vmatprep.mubr.f32.mxu0 %v1030_v0  ;;  %519 = vmatprep.mubr.f32.mxu1 %v1030_v0  ;;  %v447_v4 = vcombine.high %v445_v2, %v445_v2  ;;  %v360_v5 = vld [vmem:[%s1280_s2] sm:$0xff]  ;;  %vm364_vm1 = vcmask 31744   ;;  %s788_s8 = sshll.u32 %s1179_s30, 4  ;;  %s1286_s27 = sshll.u32 %s1019_s24, 8 }
  0x43   : > { %s1189_s18 = scalar_select %p339_p9, %s1019_s24, 1  ;;  %v444_v6 = vld [vmem:[%s1281_s3] sm:$0xff] }
  0x44   : > { %797 = vmatprep.subr.msk.mxu1 %vm368_vm0, %v447_v4  ;;  %s319_s14 = scalar_lea.vmem [#allocation5], %s788_s8  ;;  %s326_s7 = scalar_lea.vmem [#allocation6], %s788_s8 }
  0x45   : > { %s809_s20 = sshll.u32 %s1189_s18, 3  ;;  %798 = vmatpush1.msk.msra.mxu1 %vm368_vm0, %v445_v2  ;;  %s582_s15 = sshll.u32 %s319_s14, 4  ;;  %s1202_s15 = int_to_ptr.vmem [resolvable:$true] %s582_s15 }
  0x46   : > { %799 = vmatmul.mubr.msk.f32.vlgmr.msra.gmra.mrb[0].mxu1 %vm364_vm1, %v444_v6  ;;  %s580_s9 = scalar_lea.hbm %s1282_s4, %s1286_s27  ;;  %s552_s13 = scalar_lea.sflag [#allocation4], %s1179_s30 }
  0x47   : > { %s346_s16 = scalar_lea.vmem %s1297_s0, %s809_s20  ;;  %s598_s20 = sshll.u32 %s326_s7, 4  ;;  %s1204_s20 = int_to_ptr.vmem [resolvable:$true] %s598_s20 }
  0x48   : > { %v361_v1 = vld [vmem:[%s346_s16] sm:$0xff]  ;;  %s913_s17 = scalar_lea.vmem %s1202_s15, 256  ;;  %p1298_p11 = scmp.ne.s32.totalorder %s1291_s10, 0 }
  0x49   : > { %v363_v3 = vcombine.high %v361_v1, %v361_v1  ;;  %p914_p8 = scmp.ne.s32.totalorder %s1202_s15, %s913_s17  ;;  %s1031_s19 = smov [#allocation5]  }
  0x4a   : > { %s917_s8 = sshll.u32 %s1031_s19, 4  ;;  %s918_s8 = int_to_ptr.vmem [resolvable:$false] %s917_s8 }
  0x4b   : > { %794 = vmatprep.subr.msk.mxu0 %vm368_vm0, %v363_v3  ;;  %p915_p0 = pnand %p914_p8, %p1298_p11  ;;  %p920_p13 = scmp.lt.s32.totalorder %s1202_s15, %s918_s8 }
  0x4c   : > { %795 = vmatpush1.msk.msra.mxu0 %vm368_vm0, %v361_v1 }
  0x4d   : > { %796 = vmatmul.mubr.msk.f32.vlgmr.msra.gmra.mrb[0].mxu0 %vm364_vm1, %v360_v5  ;;  %p916_p7 = pneg %p915_p0 }
 0x119   : > { %v521_v8 = vpop.f32.mrb[0].mxu1 }
 0x11a   : > { %528 = vst [vmem:[%s326_s7] sm:$0xff] %v521_v8  ;;  %v523_v10 = vpop.f32.mrb[1].mxu1  ;;  %v545_v12 = vmul.f32 %v521_v8, %v521_v8 }
 0x11b   : > { %529 = vst [vmem:[%s326_s7 + $0x8] sm:$0xff] %v523_v10  ;;  %v546_v14 = vmul.f32 %v523_v10, %v523_v10  ;;  %v535_v16 = vadd.f32 %v523_v10, %v521_v8 }
 0x11d   : > { %v547_v18 = vadd.f32 %v546_v14, %v545_v12 }
 0x120   : > { %v439_v7 = vpop.f32.mrb[0].mxu0 }
 0x121   : > { %526 = vst [vmem:[%s319_s14] sm:$0xff] %v439_v7  ;;  %v441_v9 = vpop.f32.mrb[1].mxu0  ;;  %v539_v11 = vmul.f32 %v439_v7, %v439_v7 }
 0x122   : > { %527 = vst [vmem:[%s319_s14 + $0x8] sm:$0xff] %v441_v9  ;;  %v540_v13 = vmul.f32 %v441_v9, %v441_v9  ;;  %v530_v15 = vadd.f32 %v441_v9, %v439_v7  ;;  %s919_s14 = scalar_lea.vmem %s918_s8, 512 }
 0x123   : > { %p921_p3 = scmp.lt.s32.totalorder %s919_s14, %s913_s17 }
 0x124   : > { %531 = vadd.xlane.f32.xlu0 %v530_v15  ;;  %v541_v17 = vadd.f32 %v540_v13, %v539_v11 }
 0x125   : > { %p922_p6 = por %p921_p3, %p920_p13 }
 0x126   : > { %542 = vadd.xlane.f32.xlu1 %v541_v17 }
 0x127   : > { %p923_p4 = pnand %p922_p6, %p916_p7 }
 0x128   : > { %536 = vadd.xlane.f32.xlu0 %v535_v16 }
 0x12a   : > { %548 = vadd.xlane.f32.xlu1 %v547_v18 }
 0x12b   : > { %926 = shalt.err (!%p923_p4)
}
 0x12c   : > { %s927_s7 = scalar_lea.hbm %s580_s9, 256  ;;  %s931_s27 = scalar_lea.hbm %s1282_s4, 512 }
 0x12d   : > { %p928_p10 = scmp.ne.s32.totalorder %s580_s9, %s927_s7  ;;  %p932_p2 = scmp.lt.u32.totalorder %s580_s9, %s1282_s4 }
 0x12e   : > { %p933_p5 = scmp.lt.u32.totalorder %s931_s27, %s927_s7  ;;  %p935_p8 = scmp.lt.u32.totalorder %s927_s7, %s580_s9 }
 0x12f   : > { %p929_p12 = pnand %p928_p10, %p1298_p11 }
 0x130   : > { %p934_p9 = por %p933_p5, %p932_p2 }
 0x131   : > { %p930_p1 = pneg %p929_p12 }
 0x132   : > { %p936_p0 = por %p935_p8, %p934_p9 }
 0x134   : > { %p937_p7 = pnand %p936_p0, %p930_p1 }
 0x136   : > { %940 = shalt.err (!%p937_p7)
}
 0x137   : > { %815 = dma.vmem_to_hbm [thread:$0]  (%p1298_p11), %s1202_s15, 256, %s580_s9, %s552_s13  }
 0x138   : > { %s1299_s17 = sshll.u32 %s1019_s24, 8  ;;  %s557_s27 = scalar_lea.sflag [#allocation7], %s1179_s30 }
 0x139   : > { %s596_s1 = scalar_lea.hbm %s1283_s5, %s1299_s17  ;;  %s941_s8 = scalar_lea.vmem %s1204_s20, 256 }
 0x13a   : > { %p942_p13 = scmp.ne.s32.totalorder %s1204_s20, %s941_s8  ;;  %s1032_s14 = smov [#allocation6]  }
 0x13b   : > { %s945_s7 = sshll.u32 %s1032_s14, 4  ;;  %s946_s7 = int_to_ptr.vmem [resolvable:$false] %s945_s7 }
 0x13c   : > { %p943_p3 = pnand %p942_p13, %p1298_p11  ;;  %s947_s28 = scalar_lea.vmem %s946_s7, 512 }
 0x13d   : > { %p948_p4 = scmp.lt.s32.totalorder %s1204_s20, %s946_s7  ;;  %p949_p10 = scmp.lt.s32.totalorder %s947_s28, %s941_s8 }
 0x13e   : > { %p944_p6 = pneg %p943_p3 }
 0x13f   : > { %p950_p12 = por %p949_p10, %p948_p4 }
 0x141   : > { %p951_p1 = pnand %p950_p12, %p944_p6 }
 0x143   : > { %954 = shalt.err (!%p951_p1)
}
 0x144   : > { %s955_s24 = scalar_lea.hbm %s596_s1, 256  ;;  %s959_s9 = scalar_lea.hbm %s1283_s5, 512 }
 0x145   : > { %p956_p2 = scmp.ne.s32.totalorder %s596_s1, %s955_s24  ;;  %p960_p8 = scmp.lt.u32.totalorder %s596_s1, %s1283_s5 }
 0x146   : > { %p961_p0 = scmp.lt.u32.totalorder %s959_s9, %s955_s24  ;;  %p963_p13 = scmp.lt.u32.totalorder %s955_s24, %s596_s1 }
 0x147   : > { %p957_p5 = pnand %p956_p2, %p1298_p11 }
 0x148   : > { %p962_p7 = por %p961_p0, %p960_p8 }
 0x149   : > { %p958_p9 = pneg %p957_p5 }
 0x14a   : > { %p964_p3 = por %p963_p13, %p962_p7 }
 0x14c   : > { %p965_p6 = pnand %p964_p3, %p958_p9 }
 0x14e   : > { %968 = shalt.err (!%p965_p6)
}
 0x14f   : > { %816 = dma.vmem_to_hbm [thread:$0]  (%p1298_p11), %s1204_s20, 256, %s596_s1, %s557_s27   ;;  %vm533_vm2 = vcmask 7168  }
 0x150   : > { %s810_s17 = sshll.u32 %s1189_s18, 5 }
 0x151   : > { %s359_s8 = scalar_lea.vmem %s1284_s6, %s810_s17 }
 0x1b1   : > { %v532_v19 = vpop.xlane.xlu0 %531 }
 0x1b2   : > { %534 = vst.msk [vmem:[%s359_s8] sm:$0xff] %vm533_vm2, %v532_v19 }
 0x1b3   : > { %v543_v20 = vpop.xlane.xlu1 %542 }
 0x1b4   : > { %544 = vst.msk [vmem:[%s359_s8 + $0x10] sm:$0xff] %vm533_vm2, %v543_v20 }
 0x1b5   : > { %v537_v21 = vpop.xlane.xlu0 %536 }
 0x1b6   : > { %538 = vst.msk [vmem:[%s359_s8 + $0x8] sm:$0xff] %vm533_vm2, %v537_v21 }
 0x1b7   : > { %v549_v22 = vpop.xlane.xlu1 %548 }
 0x1b8   : > { %550 = vst.msk [vmem:[%s359_s8 + $0x18] sm:$0xff] %vm533_vm2, %v549_v22 }
 0x1b9 PF: > { %s613_s10 = sand.u32 1, %s1007_s21   ;;  %p1300_p11 = scmp.ne.s32.totalorder %s1292_s12, 0 }
 0x1ba   : > { %p1301_p4 = scmp.ge.s32.totalorder %s1027_s26, 2  ;;  %s614_s18 = scalar_lea.sflag [#allocation4], %s613_s10 }
 0x1bc   : > { %p824_p10 = pnand %p1301_p4, %p1300_p11 }
 0x1be   : > { %998 = dma.done.wait (!%p824_p10), %s614_s18, 256  }
 0x1bf   : > { %1000 = vsyncadd (!%p824_p10), %s614_s18, 4294967040  ;;  %s623_s20 = scalar_lea.sflag [#allocation7], %s613_s10 }
 0x1c0   : > { %1002 = dma.done.wait (!%p824_p10), %s623_s20, 256  }
 0x1c1   : > { %1004 = vsyncadd (!%p824_p10), %s623_s20, 4294967040  ;;  %s26_s26 = sadd.s32 1, %s1027_s26   ;;  %s1302_s21 = smov %s1011_s22 }
 0x1c2   : > { %p23_p12 = scmp.ge.s32.totalorder %s26_s26, 4   ;;  %s1303_s22 = smov %s1015_s23 }
 0x1c3   : > { %s1304_s23 = smov %s1124_s11  ;;  %s1305_s24 = smov %s1023_s25 }
 0x1c4   : > { %s1306_s25 = smov %s1308_s29  ;;  %25 = sbr.rel (!%p23_p12) target bundleno = 11 (0xb), region = 113 }
 0x1cb   :  { %640 = vsyncpa [#allocation3], 1 }
 0x1cc   :  { %642 = vsyncpa [#allocation3 + $0x1], 1 }
 0x1cd   :  { %643 = vsyncpa [#allocation4], 1 }
 0x1ce   :  { %645 = vsyncpa [#allocation4 + $0x1], 1 }
 0x1cf   :  { %646 = vsyncpa [#allocation7], 1 }
 0x1d0   :  { %648 = vsyncpa [#allocation7 + $0x1], 1 }

</bundles_post_ra>
